<compile_context>
chip_gen: v7x
topology: tpu7x:2x2x1
jax: 0.10.0
libtpu: 0.0.40
codegen_flags: <defaults>
</compile_context>

<pallas_src>
import functools

import jax
import jax.numpy as jnp
import numpy as np
from jax import lax
from jax.experimental import pallas as pl
from jax.experimental.pallas import tpu as pltpu


# -----------------------------------------------------------------------------
# Host-side banded weight construction.
# -----------------------------------------------------------------------------
def build_band3(w3_hwio, scale, bias, W):
    """3x3 SAME conv + folded BN as ONE matmul.

    LHS (built in the wrapper) column layout:
        col = (dy*Cin + ci) * (W+2) + w'     (w' in [0, W+2), zero halo columns
                                              at w' = 0 and w' = W+1)
        plus one trailing all-ones column (for the bias fold).
    This band (RHS):
        B[(dy*Cin+ci)*(W+2) + (w+dx), co*W + w] = scale[co] * w3[dy, dx, ci, co]
        B[3*Cin*(W+2),               co*W + w] = bias[co]
    so (LHS @ B)[row, co*W + w] = BN(conv3(x))[row, co, w].
    """
    kh, kw, cin, cout = w3_hwio.shape
    wf = (np.asarray(w3_hwio, np.float32)
          * np.asarray(scale, np.float32)[None, None, None, :])
    B = np.zeros((kh, cin, W + kw - 1, cout, W), np.float32)
    for dy in range(kh):
        for dx in range(kw):
            for w in range(W):
                B[dy, :, w + dx, :, w] = wf[dy, dx]
    B = B.reshape(kh * cin * (W + kw - 1), cout * W)
    brow = np.repeat(np.asarray(bias, np.float32)[:, None], W, axis=1)
    return np.concatenate([B, brow.reshape(1, cout * W)], axis=0)


def build_band7(w7, W):
    """7x7 score conv: dx via the band, dy via 7 shifted-slice adds.

    B[c*(W+6) + (w+dx), dy*W + w] = w7[c, dy, dx]
    """
    c2, kh, kw = w7.shape
    w7n = np.asarray(w7, np.float32)
    B = np.zeros((c2, W + kw - 1, kh, W), np.float32)
    for dy in range(kh):
        for dx in range(kw):
            for w in range(W):
                B[:, w + dx, dy, w] = w7n[:, dy, dx]
    return B.reshape(c2 * (W + kw - 1), kh * W)


# -----------------------------------------------------------------------------
# Fused kernel: one grid step = (modality, block of Nb batch samples).
#   x_ref     : (1, 1, Nb*H, 3*Cin*(W+2)+1)   host-packed dy-im2col LHS (+ones)
#   band3_ref : (1, 3*Cin*(W+2)+1, Cout*W)    banded 3x3 weights, BN+bias folded
#   band7_ref : (1, 2*(W+6), 7*W)             banded 7x7 score weights
#   feat_ref  : (1, 1, Nb*H, Cout*W)          lane-dense ReLU(BN(conv3(x)))
#   q_ref     : (1, 1, Nb*H, W)               sigmoid(conv7([max_c, mean_c]))
#   ssc       : VMEM scratch (H+6, 2*(W+6))   padded max/mean slab (per sample)
# -----------------------------------------------------------------------------
def _isqam_kernel(x_ref, band3_ref, band7_ref, feat_ref, q_ref, ssc,
                  *, H, W, Cout, Nb):
    CW = Cout * W
    Wp6 = W + 6

    # ---- Stage A: 3x3 conv + BN + bias + ReLU = ONE MXU matmul --------------
    # (dy is folded into the K dimension; bias enters via the ones column.)
    acc = jnp.dot(x_ref[0, 0], band3_ref[0],
                  preferred_element_type=jnp.float32)     # (Nb*H, Cout*W) f32
    feat = jnp.maximum(acc, 0.0)                          # slab-wide ReLU
    feat_ref[0, 0] = feat.astype(feat_ref.dtype)          # one lane-dense store

    # ---- Channel max / mean (inputs of the 7x7 score conv) ------------------
    if Cout > 1 and (Cout & (Cout - 1)) == 0 and (CW % 128 == 0):
        # Full-width XLU lane-roll reduction tree: log2(Cout) rolls + max/add,
        # no 16-lane masked slices.
        mx = feat
        sm = feat
        span = CW // 2
        while span >= W:
            mx = jnp.maximum(mx, pltpu.roll(mx, span, axis=1))
            sm = sm + pltpu.roll(sm, span, axis=1)
            span //= 2
        mx = mx[:, :W]
        av = sm[:, :W] * (1.0 / Cout)
    else:
        mx = feat[:, 0:W]
        sm = feat[:, 0:W]
        for co in range(1, Cout):
            blk = feat[:, co * W:(co + 1) * W]
            mx = jnp.maximum(mx, blk)
            sm = sm + blk
        av = sm * (1.0 / Cout)

    # ---- Stage B: 7x7 spatial-attention score + sigmoid, per sample ---------
    # Halo region of ssc is zeroed once per step; data windows are fully
    # overwritten for every sample.
    ssc[...] = jnp.zeros_like(ssc)
    for b in range(Nb):
        r0 = b * H
        ssc[3:3 + H, 3:3 + W] = mx[r0:r0 + H, :]                    # channel 0: max
        ssc[3:3 + H, Wp6 + 3:Wp6 + 3 + W] = av[r0:r0 + H, :]        # channel 1: mean
        rsc = jnp.dot(ssc[...].astype(band7_ref.dtype), band7_ref[0],
                      preferred_element_type=jnp.float32)           # (H+6, 7*W)
        q = rsc[0:H, 0:W]                                           # dy = 0
        for dy in range(1, 7):
            q = q + rsc[dy:dy + H, dy * W:(dy + 1) * W]
        q_ref[0, 0, r0:r0 + H, :] = jax.nn.sigmoid(q).astype(q_ref.dtype)


# -----------------------------------------------------------------------------
# ISQAM forward (NCHW in / NCHW out, matching the PyTorch module).
# -----------------------------------------------------------------------------
def isqam_forward(x_list_nchw, params_rgb, params_thermal, params_depth,
                  *, block_batch=None,
                  mxu_dtype=jnp.float32,      # bfloat16 recommended on v6e/v7x
                  out_dtype=jnp.float32):     # bfloat16 halves writeback on v5e
    params = (params_rgb, params_thermal, params_depth)   # rgb, thermal, depth
    x_all = jnp.stack([x.astype(jnp.float32) for x in x_list_nchw], axis=0)
    M, N, Cin, H, W = x_all.shape                          # M == 3
    Cout = int(params_rgb["bias"].shape[0])
    CW = Cout * W
    K3 = 3 * Cin * (W + 2)

    # Batch block per grid step (fills the MXU M dimension).
    if block_batch is None:
        block_batch = max(1, min(N, max(1, 256 // H)))
    Nb = int(block_batch)
    NB = -(-N // Nb)
    Npad = NB * Nb
    if Npad != N:
        x_all = jnp.pad(x_all, ((0, 0), (0, Npad - N), (0, 0), (0, 0), (0, 0)))

    # ---- Host-side dy-im2col packing (no in-kernel padding / copies) --------
    xp = jnp.pad(x_all, ((0, 0), (0, 0), (0, 0), (1, 1), (1, 1)))   # SAME pad
    xs = jnp.stack([xp[:, :, :, dy:dy + H, :] for dy in range(3)], axis=2)
    xs = jnp.transpose(xs, (0, 1, 4, 2, 3, 5))            # (M,Npad,H,3,Cin,W+2)
    xs = xs.reshape(M, Npad, H, K3)
    xs = jnp.concatenate(
        [xs, jnp.ones((M, Npad, H, 1), xs.dtype)], axis=-1)          # bias col
    xs = xs.reshape(M, NB, Nb * H, K3 + 1).astype(mxu_dtype)

    band3 = jnp.stack([p["band3"] for p in params]).astype(mxu_dtype)  # (3,K3+1,CW)
    band7 = jnp.stack([p["band7"] for p in params]).astype(mxu_dtype)  # (3,2*(W+6),7W)

    kernel = functools.partial(_isqam_kernel, H=H, W=W, Cout=Cout, Nb=Nb)
    feat_all, q_all = pl.pallas_call(
        kernel,
        out_shape=(jax.ShapeDtypeStruct((M, NB, Nb * H, CW), out_dtype),
                   jax.ShapeDtypeStruct((M, NB, Nb * H, W), out_dtype)),
        grid=(M, NB),
        in_specs=[
            pl.BlockSpec((1, 1, Nb * H, K3 + 1), lambda m, n: (m, n, 0, 0)),
            pl.BlockSpec((1, K3 + 1, CW), lambda m, n: (m, 0, 0)),
            pl.BlockSpec((1, 2 * (W + 6), 7 * W), lambda m, n: (m, 0, 0)),
        ],
        out_specs=[
            pl.BlockSpec((1, 1, Nb * H, CW), lambda m, n: (m, n, 0, 0)),
            pl.BlockSpec((1, 1, Nb * H, W), lambda m, n: (m, n, 0, 0)),
        ],
        scratch_shapes=[
            pltpu.VMEM((H + 6, 2 * (W + 6)), jnp.float32),  # padded max/mean
        ],
        compiler_params=pltpu.CompilerParams(
            dimension_semantics=("parallel", "parallel")),
    )(xs, band3, band7)

    # Wrapper-side (XLA) relayout back to NCHW.
    feat = feat_all.astype(jnp.float32).reshape(M, NB, Nb, H, Cout, W)
    feat = jnp.transpose(feat, (0, 1, 2, 4, 3, 5)).reshape(M, Npad, Cout, H, W)
    q = q_all.astype(jnp.float32).reshape(M, Npad, H, W)

    feats = [feat[i, :N] for i in range(M)]                # (N, Cout, H, W)
    scores = [q[i, :N][:, None, :, :] for i in range(M)]   # (N, 1, H, W)
    return feats, scores


# -----------------------------------------------------------------------------
# Parameter construction (deterministic, synthetic).
# -----------------------------------------------------------------------------
def make_modality_params(key, in_channels, out_channels, W):
    k1, k2, k3 = jax.random.split(key, 3)
    # 3x3 conv weight in HWIO layout (3,3,Cin,Cout), bias (Cout,).
    w3 = 0.05 * jax.random.normal(k1, (3, 3, in_channels, out_channels),
                                  jnp.float32)
    b3 = 0.01 * jax.random.normal(k2, (out_channels,), jnp.float32)
    # BatchNorm (inference-mode) parameters.
    gamma = 1.0 + 0.1 * jnp.arange(out_channels, dtype=jnp.float32) / out_channels
    beta = 0.01 * jnp.arange(out_channels, dtype=jnp.float32)
    mean = jnp.zeros((out_channels,), jnp.float32)
    var = jnp.ones((out_channels,), jnp.float32)
    eps = 1e-5
    scale = gamma / jnp.sqrt(var + eps)
    bias = beta + (b3 - mean) * scale
    # 7x7 score conv weight, PyTorch shape [1, 2, 7, 7] (no bias) -> (2,7,7).
    w7 = 0.05 * jax.random.normal(k3, (2, 7, 7), jnp.float32)
    return {
        "w3": w3,                                   # reference only
        "scale": scale,                             # reference only
        "bias": bias,                               # (Cout,) folded shift
        "w7": w7,                                   # reference only
        "band3": jnp.asarray(build_band3(np.asarray(w3), np.asarray(scale),
                                         np.asarray(bias), W)),
        "band7": jnp.asarray(build_band7(np.asarray(w7), W)),
    }


# -----------------------------------------------------------------------------
# Pure-JAX reference (for verification only).
# -----------------------------------------------------------------------------
def _ref_modality(x_nchw, p):
    dn = ("NHWC", "HWIO", "NHWC")
    x = jnp.transpose(x_nchw, (0, 2, 3, 1)).astype(jnp.float32)
    y = lax.conv_general_dilated(x, p["w3"], (1, 1), "SAME",
                                 dimension_numbers=dn)
    y = y * p["scale"] + p["bias"]
    feat = jnp.maximum(y, 0.0)
    mx = jnp.max(feat, axis=-1, keepdims=True)
    av = jnp.mean(feat, axis=-1, keepdims=True)
    s = jnp.concatenate([mx, av], axis=-1)
    w7_hwio = jnp.transpose(p["w7"], (1, 2, 0))[..., None]    # (7,7,2,1)
    q = lax.conv_general_dilated(s, w7_hwio, (1, 1), "SAME",
                                 dimension_numbers=dn)
    q = jax.nn.sigmoid(q)
    return jnp.transpose(feat, (0, 3, 1, 2)), jnp.transpose(q, (0, 3, 1, 2))


if __name__ == "__main__":
    N, Cin, Cout, H, W = 2, 4, 8, 16, 16

    key = jax.random.PRNGKey(0)
    kx0, kx1, kx2, kp0, kp1, kp2 = jax.random.split(key, 6)
    x = [
        jax.random.normal(kx0, (N, Cin, H, W), jnp.float32),
        jax.random.normal(kx1, (N, Cin, H, W), jnp.float32),
        jax.random.normal(kx2, (N, Cin, H, W), jnp.float32),
    ]
    p_rgb = make_modality_params(kp0, Cin, Cout, W)
    p_thm = make_modality_params(kp1, Cin, Cout, W)
    p_dep = make_modality_params(kp2, Cin, Cout, W)

    feats, scores = isqam_forward(x, p_rgb, p_thm, p_dep)
    feats = [jax.block_until_ready(f) for f in feats]
    scores = [jax.block_until_ready(q) for q in scores]

    # Verify against pure-JAX reference.
    for i, p in enumerate((p_rgb, p_thm, p_dep)):
        ref_f, ref_q = _ref_modality(x[i], p)
        np.testing.assert_allclose(np.asarray(feats[i]), np.asarray(ref_f),
                                   rtol=1e-3, atol=5e-4)
        np.testing.assert_allclose(np.asarray(scores[i]), np.asarray(ref_q),
                                   rtol=1e-3, atol=5e-4)
        assert feats[i].shape == (N, Cout, H, W)
        assert scores[i].shape == (N, 1, H, W)

    print("KERNEL_OK")
</pallas_src>

<mosaic_0001>
module attributes {stable_mosaic.version = 11 : i64} {
  func.func @_isqam_kernel(%arg0: i32, %arg1: i32, %arg2: memref<1x1x32x217xf32, #tpu.memory_space<vmem>>, %arg3: memref<1x217x128xf32, #tpu.memory_space<vmem>>, %arg4: memref<1x44x112xf32, #tpu.memory_space<vmem>>, %arg5: memref<1x1x32x128xf32, #tpu.memory_space<vmem>>, %arg6: memref<1x1x32x16xf32, #tpu.memory_space<vmem>>, %arg7: memref<22x44xf32, #tpu.memory_space<vmem>>) attributes {dimension_semantics = [#tpu.dimension_semantics<parallel>, #tpu.dimension_semantics<parallel>], iteration_bounds = array<i64: 3, 1>, scalar_prefetch = 0 : i64, scratch_operands = 1 : i64, tpu.core_type = #tpu.core_type<tc>, window_params = [{transform_indices = @transform_0, window_bounds = array<i64: 1, 1, 32, 217>}, {transform_indices = @transform_1, window_bounds = array<i64: 1, 217, 128>}, {transform_indices = @transform_2, window_bounds = array<i64: 1, 44, 112>}, {transform_indices = @transform_3, window_bounds = array<i64: 1, 1, 32, 128>}, {transform_indices = @transform_4, window_bounds = array<i64: 1, 1, 32, 16>}]} {
    %c0 = arith.constant 0 : index
    %c0_0 = arith.constant 0 : index
    %c0_1 = arith.constant 0 : index
    %c0_2 = arith.constant 0 : index
    %0 = vector.load %arg2[%c0, %c0_0, %c0_1, %c0_2] : memref<1x1x32x217xf32, #tpu.memory_space<vmem>>, vector<1x1x32x217xf32>
    %1 = vector.shape_cast %0 : vector<1x1x32x217xf32> to vector<32x217xf32>
    %c0_3 = arith.constant 0 : index
    %c0_4 = arith.constant 0 : index
    %c0_5 = arith.constant 0 : index
    %2 = vector.load %arg3[%c0_3, %c0_4, %c0_5] : memref<1x217x128xf32, #tpu.memory_space<vmem>>, vector<1x217x128xf32>
    %3 = vector.shape_cast %2 : vector<1x217x128xf32> to vector<217x128xf32>
    %cst = arith.constant dense<0.000000e+00> : vector<32x128xf32>
    %4 = tpu.matmul %1, %3, %cst {dimension_numbers = #tpu.dot_dimension_numbers<[1], [0], [0], [1], [0, 0, 1, 1], [], []>} : vector<32x217xf32>, vector<217x128xf32>, vector<32x128xf32> -> vector<32x128xf32>
    %cst_6 = arith.constant 0.000000e+00 : f32
    %5 = vector.broadcast %cst_6 : f32 to vector<32x128xf32>
    %6 = arith.maximumf %4, %5 : vector<32x128xf32>
    %c0_7 = arith.constant 0 : index
    %c0_8 = arith.constant 0 : index
    %c0_9 = arith.constant 0 : index
    %c0_10 = arith.constant 0 : index
    %7 = vector.load %arg5[%c0_7, %c0_8, %c0_9, %c0_10] : memref<1x1x32x128xf32, #tpu.memory_space<vmem>>, vector<1x1x32x128xf32>
    %8 = vector.shape_cast %7 : vector<1x1x32x128xf32> to vector<32x128xf32>
    %9 = vector.shape_cast %6 : vector<32x128xf32> to vector<1x1x32x128xf32>
    tpu.vector_store %arg5[%c0_7, %c0_8, %c0_9, %c0_10], %9 {strides = array<i32>} : memref<1x1x32x128xf32, #tpu.memory_space<vmem>>, vector<1x1x32x128xf32>,
    %c64_i32 = arith.constant 64 : i32
    %10 = tpu.dynamic_rotate %6 by %c64_i32 dim 1 : vector<32x128xf32>, i32 -> vector<32x128xf32>
    %11 = arith.maximumf %6, %10 : vector<32x128xf32>
    %c64_i32_11 = arith.constant 64 : i32
    %12 = tpu.dynamic_rotate %6 by %c64_i32_11 dim 1 : vector<32x128xf32>, i32 -> vector<32x128xf32>
    %13 = arith.addf %6, %12 : vector<32x128xf32>
    %c32_i32 = arith.constant 32 : i32
    %14 = tpu.dynamic_rotate %11 by %c32_i32 dim 1 : vector<32x128xf32>, i32 -> vector<32x128xf32>
    %15 = arith.maximumf %11, %14 : vector<32x128xf32>
    %c32_i32_12 = arith.constant 32 : i32
    %16 = tpu.dynamic_rotate %13 by %c32_i32_12 dim 1 : vector<32x128xf32>, i32 -> vector<32x128xf32>
    %17 = arith.addf %13, %16 : vector<32x128xf32>
    %c16_i32 = arith.constant 16 : i32
    %18 = tpu.dynamic_rotate %15 by %c16_i32 dim 1 : vector<32x128xf32>, i32 -> vector<32x128xf32>
    %19 = arith.maximumf %15, %18 : vector<32x128xf32>
    %c16_i32_13 = arith.constant 16 : i32
    %20 = tpu.dynamic_rotate %17 by %c16_i32_13 dim 1 : vector<32x128xf32>, i32 -> vector<32x128xf32>
    %21 = arith.addf %17, %20 : vector<32x128xf32>
    %22 = vector.extract_strided_slice %19 {offsets = [0, 0], sizes = [32, 16], strides = [1, 1]} : vector<32x128xf32> to vector<32x16xf32>
    %23 = vector.extract_strided_slice %21 {offsets = [0, 0], sizes = [32, 16], strides = [1, 1]} : vector<32x128xf32> to vector<32x16xf32>
    %cst_14 = arith.constant 1.250000e-01 : f32
    %24 = vector.broadcast %cst_14 : f32 to vector<32x16xf32>
    %25 = arith.mulf %23, %24 : vector<32x16xf32>
    %cst_15 = arith.constant 0.000000e+00 : f32
    %26 = vector.broadcast %cst_15 : f32 to vector<22x44xf32>
    %c0_16 = arith.constant 0 : index
    %c0_17 = arith.constant 0 : index
    %27 = vector.load %arg7[%c0_16, %c0_17] : memref<22x44xf32, #tpu.memory_space<vmem>>, vector<22x44xf32>
    tpu.vector_store %arg7[%c0_16, %c0_17], %26 {strides = array<i32>} : memref<22x44xf32, #tpu.memory_space<vmem>>, vector<22x44xf32>,
    %28 = vector.extract_strided_slice %22 {offsets = [0, 0], sizes = [16, 16], strides = [1, 1]} : vector<32x16xf32> to vector<16x16xf32>
    %c3 = arith.constant 3 : index
    %c3_18 = arith.constant 3 : index
    %29 = vector.load %arg7[%c3, %c3_18] : memref<22x44xf32, #tpu.memory_space<vmem>>, vector<16x16xf32>
    tpu.vector_store %arg7[%c3, %c3_18], %28 {strides = array<i32>} : memref<22x44xf32, #tpu.memory_space<vmem>>, vector<16x16xf32>,
    %30 = vector.extract_strided_slice %25 {offsets = [0, 0], sizes = [16, 16], strides = [1, 1]} : vector<32x16xf32> to vector<16x16xf32>
    %c3_19 = arith.constant 3 : index
    %c25 = arith.constant 25 : index
    %31 = vector.load %arg7[%c3_19, %c25] : memref<22x44xf32, #tpu.memory_space<vmem>>, vector<16x16xf32>
    tpu.vector_store %arg7[%c3_19, %c25], %30 {strides = array<i32>} : memref<22x44xf32, #tpu.memory_space<vmem>>, vector<16x16xf32>,
    %c0_20 = arith.constant 0 : index
    %c0_21 = arith.constant 0 : index
    %32 = vector.load %arg7[%c0_20, %c0_21] : memref<22x44xf32, #tpu.memory_space<vmem>>, vector<22x44xf32>
    %c0_22 = arith.constant 0 : index
    %c0_23 = arith.constant 0 : index
    %c0_24 = arith.constant 0 : index
    %33 = vector.load %arg4[%c0_22, %c0_23, %c0_24] : memref<1x44x112xf32, #tpu.memory_space<vmem>>, vector<1x44x112xf32>
    %34 = vector.shape_cast %33 : vector<1x44x112xf32> to vector<44x112xf32>
    %cst_25 = arith.constant dense<0.000000e+00> : vector<22x112xf32>
    %35 = tpu.matmul %32, %34, %cst_25 {dimension_numbers = #tpu.dot_dimension_numbers<[1], [0], [0], [1], [0, 0, 1, 1], [], []>} : vector<22x44xf32>, vector<44x112xf32>, vector<22x112xf32> -> vector<22x112xf32>
    %36 = vector.extract_strided_slice %35 {offsets = [0, 0], sizes = [16, 16], strides = [1, 1]} : vector<22x112xf32> to vector<16x16xf32>
    %37 = vector.extract_strided_slice %35 {offsets = [1, 16], sizes = [16, 16], strides = [1, 1]} : vector<22x112xf32> to vector<16x16xf32>
    %38 = arith.addf %36, %37 : vector<16x16xf32>
    %39 = vector.extract_strided_slice %35 {offsets = [2, 32], sizes = [16, 16], strides = [1, 1]} : vector<22x112xf32> to vector<16x16xf32>
    %40 = arith.addf %38, %39 : vector<16x16xf32>
    %41 = vector.extract_strided_slice %35 {offsets = [3, 48], sizes = [16, 16], strides = [1, 1]} : vector<22x112xf32> to vector<16x16xf32>
    %42 = arith.addf %40, %41 : vector<16x16xf32>
    %43 = vector.extract_strided_slice %35 {offsets = [4, 64], sizes = [16, 16], strides = [1, 1]} : vector<22x112xf32> to vector<16x16xf32>
    %44 = arith.addf %42, %43 : vector<16x16xf32>
    %45 = vector.extract_strided_slice %35 {offsets = [5, 80], sizes = [16, 16], strides = [1, 1]} : vector<22x112xf32> to vector<16x16xf32>
    %46 = arith.addf %44, %45 : vector<16x16xf32>
    %47 = vector.extract_strided_slice %35 {offsets = [6, 96], sizes = [16, 16], strides = [1, 1]} : vector<22x112xf32> to vector<16x16xf32>
    %48 = arith.addf %46, %47 : vector<16x16xf32>
    %49 = arith.negf %48 : vector<16x16xf32>
    %50 = math.exp %49 : vector<16x16xf32>
    %cst_26 = arith.constant 1.000000e+00 : f32
    %51 = vector.broadcast %cst_26 : f32 to vector<16x16xf32>
    %52 = arith.addf %51, %50 : vector<16x16xf32>
    %53 = arith.divf %51, %52 : vector<16x16xf32>
    %c0_27 = arith.constant 0 : index
    %c0_28 = arith.constant 0 : index
    %c0_29 = arith.constant 0 : index
    %c0_30 = arith.constant 0 : index
    %54 = vector.load %arg6[%c0_27, %c0_28, %c0_29, %c0_30] : memref<1x1x32x16xf32, #tpu.memory_space<vmem>>, vector<1x1x16x16xf32>
    %55 = vector.shape_cast %54 : vector<1x1x16x16xf32> to vector<16x16xf32>
    %56 = vector.shape_cast %53 : vector<16x16xf32> to vector<1x1x16x16xf32>
    tpu.vector_store %arg6[%c0_27, %c0_28, %c0_29, %c0_30], %56 {strides = array<i32>} : memref<1x1x32x16xf32, #tpu.memory_space<vmem>>, vector<1x1x16x16xf32>,
    %57 = vector.extract_strided_slice %22 {offsets = [16, 0], sizes = [16, 16], strides = [1, 1]} : vector<32x16xf32> to vector<16x16xf32>
    %c3_31 = arith.constant 3 : index
    %c3_32 = arith.constant 3 : index
    %58 = vector.load %arg7[%c3_31, %c3_32] : memref<22x44xf32, #tpu.memory_space<vmem>>, vector<16x16xf32>
    tpu.vector_store %arg7[%c3_31, %c3_32], %57 {strides = array<i32>} : memref<22x44xf32, #tpu.memory_space<vmem>>, vector<16x16xf32>,
    %59 = vector.extract_strided_slice %25 {offsets = [16, 0], sizes = [16, 16], strides = [1, 1]} : vector<32x16xf32> to vector<16x16xf32>
    %c3_33 = arith.constant 3 : index
    %c25_34 = arith.constant 25 : index
    %60 = vector.load %arg7[%c3_33, %c25_34] : memref<22x44xf32, #tpu.memory_space<vmem>>, vector<16x16xf32>
    tpu.vector_store %arg7[%c3_33, %c25_34], %59 {strides = array<i32>} : memref<22x44xf32, #tpu.memory_space<vmem>>, vector<16x16xf32>,
    %c0_35 = arith.constant 0 : index
    %c0_36 = arith.constant 0 : index
    %61 = vector.load %arg7[%c0_35, %c0_36] : memref<22x44xf32, #tpu.memory_space<vmem>>, vector<22x44xf32>
    %c0_37 = arith.constant 0 : index
    %c0_38 = arith.constant 0 : index
    %c0_39 = arith.constant 0 : index
    %62 = vector.load %arg4[%c0_37, %c0_38, %c0_39] : memref<1x44x112xf32, #tpu.memory_space<vmem>>, vector<1x44x112xf32>
    %63 = vector.shape_cast %62 : vector<1x44x112xf32> to vector<44x112xf32>
    %cst_40 = arith.constant dense<0.000000e+00> : vector<22x112xf32>
    %64 = tpu.matmul %61, %63, %cst_40 {dimension_numbers = #tpu.dot_dimension_numbers<[1], [0], [0], [1], [0, 0, 1, 1], [], []>} : vector<22x44xf32>, vector<44x112xf32>, vector<22x112xf32> -> vector<22x112xf32>
    %65 = vector.extract_strided_slice %64 {offsets = [0, 0], sizes = [16, 16], strides = [1, 1]} : vector<22x112xf32> to vector<16x16xf32>
    %66 = vector.extract_strided_slice %64 {offsets = [1, 16], sizes = [16, 16], strides = [1, 1]} : vector<22x112xf32> to vector<16x16xf32>
    %67 = arith.addf %65, %66 : vector<16x16xf32>
    %68 = vector.extract_strided_slice %64 {offsets = [2, 32], sizes = [16, 16], strides = [1, 1]} : vector<22x112xf32> to vector<16x16xf32>
    %69 = arith.addf %67, %68 : vector<16x16xf32>
    %70 = vector.extract_strided_slice %64 {offsets = [3, 48], sizes = [16, 16], strides = [1, 1]} : vector<22x112xf32> to vector<16x16xf32>
    %71 = arith.addf %69, %70 : vector<16x16xf32>
    %72 = vector.extract_strided_slice %64 {offsets = [4, 64], sizes = [16, 16], strides = [1, 1]} : vector<22x112xf32> to vector<16x16xf32>
    %73 = arith.addf %71, %72 : vector<16x16xf32>
    %74 = vector.extract_strided_slice %64 {offsets = [5, 80], sizes = [16, 16], strides = [1, 1]} : vector<22x112xf32> to vector<16x16xf32>
    %75 = arith.addf %73, %74 : vector<16x16xf32>
    %76 = vector.extract_strided_slice %64 {offsets = [6, 96], sizes = [16, 16], strides = [1, 1]} : vector<22x112xf32> to vector<16x16xf32>
    %77 = arith.addf %75, %76 : vector<16x16xf32>
    %78 = arith.negf %77 : vector<16x16xf32>
    %79 = math.exp %78 : vector<16x16xf32>
    %cst_41 = arith.constant 1.000000e+00 : f32
    %80 = vector.broadcast %cst_41 : f32 to vector<16x16xf32>
    %81 = arith.addf %80, %79 : vector<16x16xf32>
    %82 = arith.divf %80, %81 : vector<16x16xf32>
    %c0_42 = arith.constant 0 : index
    %c0_43 = arith.constant 0 : index
    %c16 = arith.constant 16 : index
    %c0_44 = arith.constant 0 : index
    %83 = vector.load %arg6[%c0_42, %c0_43, %c16, %c0_44] : memref<1x1x32x16xf32, #tpu.memory_space<vmem>>, vector<1x1x16x16xf32>
    %84 = vector.shape_cast %83 : vector<1x1x16x16xf32> to vector<16x16xf32>
    %85 = vector.shape_cast %82 : vector<16x16xf32> to vector<1x1x16x16xf32>
    tpu.vector_store %arg6[%c0_42, %c0_43, %c16, %c0_44], %85 {strides = array<i32>} : memref<1x1x32x16xf32, #tpu.memory_space<vmem>>, vector<1x1x16x16xf32>,
    return
  }
  func.func @transform_0(%arg0: i32, %arg1: i32) -> (i32, i32, i32, i32) {
    %c0_i32 = arith.constant 0 : i32
    %c0_i32_0 = arith.constant 0 : i32
    %c0_i32_1 = arith.constant 0 : i32
    return %arg0, %arg1, %c0_i32, %c0_i32_0 : i32, i32, i32, i32
  }
  func.func @transform_1(%arg0: i32, %arg1: i32) -> (i32, i32, i32) {
    %c0_i32 = arith.constant 0 : i32
    %c0_i32_0 = arith.constant 0 : i32
    %c0_i32_1 = arith.constant 0 : i32
    return %arg0, %c0_i32, %c0_i32_0 : i32, i32, i32
  }
  func.func @transform_2(%arg0: i32, %arg1: i32) -> (i32, i32, i32) {
    %c0_i32 = arith.constant 0 : i32
    %c0_i32_0 = arith.constant 0 : i32
    %c0_i32_1 = arith.constant 0 : i32
    return %arg0, %c0_i32, %c0_i32_0 : i32, i32, i32
  }
  func.func @transform_3(%arg0: i32, %arg1: i32) -> (i32, i32, i32, i32) {
    %c0_i32 = arith.constant 0 : i32
    %c0_i32_0 = arith.constant 0 : i32
    %c0_i32_1 = arith.constant 0 : i32
    return %arg0, %arg1, %c0_i32, %c0_i32_0 : i32, i32, i32, i32
  }
  func.func @transform_4(%arg0: i32, %arg1: i32) -> (i32, i32, i32, i32) {
    %c0_i32 = arith.constant 0 : i32
    %c0_i32_0 = arith.constant 0 : i32
    %c0_i32_1 = arith.constant 0 : i32
    return %arg0, %arg1, %c0_i32, %c0_i32_0 : i32, i32, i32, i32
  }
}

</mosaic_0001>

<bundles_post_ra>
// kernel: tpu_custom_call.1
= control target key start
LH: loop header
LB: loop body
LE: loop exit
PB: predicated region body
PF: predicated region fallthrough
CT: control target
= control target key end

     0   :  { %s2202_s0 = inlined_call_operand.hbm [shape: f32[3,1,32,217], index: 0, kind: input, shape index: {}]   ;;  %s2203_s1 = inlined_call_operand.hbm [shape: f32[3,217,128], index: 1, kind: input, shape index: {}]   ;;  %s2204_s2 = inlined_call_operand.hbm [shape: f32[3,44,112], index: 2, kind: input, shape index: {}]   ;;  %s2205_s3 = inlined_call_operand.hbm [shape: f32[3,1,32,128], index: 3, kind: output, shape index: {0}]   ;;  %s2206_s4 = inlined_call_operand.vmem [shape: f32[3,1,32,16], index: 4, kind: output, shape index: {1}]  }
   0x1   :  { %2212 = sst [smem:[#allocation15_spill]] %s2202_s0 }
   0x2   :  { %2213 = sst [smem:[#allocation16_spill]] %s2203_s1 }
   0x3   :  { %10 = vsyncpa [#allocation4], 0 }
   0x4   :  { %12 = vsyncpa [#allocation4 + $0x1], 0 }
   0x5   :  { %13 = vsyncpa [#allocation7], 0 }
   0x6   :  { %15 = vsyncpa [#allocation7 + $0x1], 0 }
   0x7   :  { %16 = vsyncpa [#allocation5], 0 }
   0x8   :  { %18 = vsyncpa [#allocation5 + $0x1], 0  ;;  %s1694_s15 = smov 0   ;;  %s1696_s16 = smov 0  }
   0x9   :  { %s1698_s17 = smov 0   ;;  %s1700_s18 = smov 0  }
   0xa   :  { %s1702_s19 = smov 0   ;;  %s1704_s20 = smov 0  }
   0xb LB: > { %s1725_s21 = sadd.s32 4294967295, %s1644_s20   ;;  %s1194_s22 = sadd.s32 4294967294, %s1644_s20   ;;  %s1644_s20 = sphi %s1704_s20, %s24_s20   ;;  %s1640_s19 = sphi %s1702_s19, %s2239_s19   ;;  %s1636_s18 = sphi %s1700_s18, %s2238_s18   ;;  %s1632_s17 = sphi %s1698_s17, %s2237_s17   ;;  %s1628_s16 = sphi %s1696_s16, %s2236_s16   ;;  %s1624_s15 = sphi %s1694_s15, %s2235_s15  }
   0xc   : > { %s36_s23 = sadd.s32 1, %s1640_s19  ;;  %s45_s24 = sadd.s32 1, %s1632_s17 }
   0xd   : > { %p38_p0 = scmp.ge.s32.totalorder %s36_s23, 3  ;;  %p52_p1 = scmp.ne.s32.totalorder %s1632_s17, %s1628_s16 }
   0xe   : > { %p53_p2 = scmp.eq.s32.totalorder %s1644_s20, 0  ;;  %p58_p3 = scmp.ne.s32.totalorder %s1628_s16, %s1624_s15 }
   0xf   : > { %s2241_s23 = smov (%p38_p0, %s36_s23), 0  ;;  %p59_p5 = scmp.eq.s32.totalorder %s1725_s21, 0 }
  0x10   : > { %2214 = sst [smem:[#allocation13_spill]] %s2241_s23  ;;  %p1737_p4 = por %p53_p2, %p52_p1 }
  0x11   : > { %s40_s26 = ssub.s32 %s1640_s19, %s2241_s23  ;;  %p136_p6 = scmp.eq.s32.totalorder %s1725_s21, 2 }
  0x12   : > { %p43_p7 = scmp.eq.s32.totalorder %s40_s26, 0  ;;  %p1745_p8 = por %p59_p5, %p58_p3 }
  0x13   : > { %p1749_p9 = por %p136_p6, %p52_p1  ;;  %p142_p10 = scmp.eq.s32.totalorder %s1194_s22, 2 }
  0x14   : > { %s2216_s27 = scalar_select %p1745_p8, 1, 0 }
  0x15   : > { %s2217_s28 = scalar_select %p1749_p9, 1, 0 }
  0x16   : > { %s1754_s29 = scalar_select %p43_p7, %s1632_s17, %s45_s24  }
  0x17   : > { %p1756_p11 = por %p142_p10, %p58_p3  ;;  %p1383_p12 = scmp.lt.s32.totalorder %s1644_s20, 3 }
  0x18   : > { %2218 = sst [smem:[#allocation14_spill]] %s1754_s29  ;;  %s1762_s5 = sand.u32 1, %s1632_s17  }
  0x19   : > { %s2219_s30 = scalar_select %p1756_p11, 1, 0 }
  0x1a   : > { %s213_s6 = sand.u32 1, %s1644_s20   ;;  %s1355_s7 = smul.u32 224, %s1762_s5 }
  0x1b   : > { %p1768_p13 = pnand %p1383_p12, %p1737_p4  ;;  %s1356_s9 = smul.u32 3584, %s1640_s19 }
  0x1c   : > { %s217_s10 = scalar_lea.vmem [#allocation6], %s1355_s7  ;;  %s2221_s1 = sld [smem:[#allocation16_spill]] }
  0x1d   : > { %s224_s11 = sshll.u32 %s217_s10, 4  ;;  %s1780_s22 = scalar_lea.sflag [#allocation7], %s213_s6  ;;  %s1778_s11 = int_to_ptr.vmem [resolvable:$true] %s224_s11 }
  0x1e   : > { %p1786_p1 = pneg %p1768_p13 }
  0x22   : > { %s1776_s14 = scalar_lea.hbm %s2221_s1, %s1356_s9  ;;  %s1473_s9 = scalar_lea.hbm %s2221_s1, 10752 }
  0x23   : > { %s1468_s24 = scalar_lea.hbm %s1776_s14, 3584  ;;  %p1474_p4 = scmp.lt.u32.totalorder %s1776_s14, %s2221_s1 }
  0x24   : > { %p1469_p0 = scmp.ne.s32.totalorder %s1776_s14, %s1468_s24  ;;  %p1475_p5 = scmp.lt.u32.totalorder %s1473_s9, %s1468_s24 }
  0x25   : > { %p1477_p7 = scmp.lt.u32.totalorder %s1468_s24, %s1776_s14 }
  0x26   : > { %p1471_p2 = pnand %p1786_p1, %p1469_p0  ;;  %p1476_p6 = por %p1475_p5, %p1474_p4 }
  0x28   : > { %p1472_p3 = pneg %p1471_p2  ;;  %p1478_p10 = por %p1477_p7, %p1476_p6 }
  0x2a   : > { %p1479_p12 = pnand %p1478_p10, %p1472_p3 }
  0x2c   : > { %1482 = shalt.err (!%p1479_p12)
}
  0x2d   : > { %s1483_s6 = scalar_lea.vmem %s1778_s11, 3584  ;;  %s1646_s13 = smov [#allocation6]  }
  0x2e   : > { %p1484_p0 = scmp.ne.s32.totalorder %s1778_s11, %s1483_s6  ;;  %s1488_s26 = sshll.u32 %s1646_s13, 4  ;;  %s1489_s26 = int_to_ptr.vmem [resolvable:$false] %s1488_s26 }
  0x2f   : > { %s1490_s7 = scalar_lea.vmem %s1489_s26, 7168  ;;  %p1491_p9 = scmp.lt.s32.totalorder %s1778_s11, %s1489_s26 }
  0x30   : > { %p1486_p2 = pnand %p1484_p0, %p1786_p1  ;;  %p1492_p8 = scmp.lt.s32.totalorder %s1490_s7, %s1483_s6 }
  0x32   : > { %p1487_p11 = pneg %p1486_p2  ;;  %p1493_p4 = por %p1492_p8, %p1491_p9 }
  0x34   : > { %p1494_p5 = pnand %p1493_p4, %p1487_p11 }
  0x36   : > { %1497 = shalt.err (!%p1494_p5)
}
  0x37   : > { %s2210_s24 = smov 128   ;;  %s2211_s9 = smov 8  }
  0x38   : > { %1375 = dma.hbm_to_vmem [thread:$0]  (!%p1768_p13), %s1776_s14, 3584, %s1778_s11, %s1780_s22, %s2210_s24, %s2210_s24, %s2211_s9  }
  0x39   : > { %p1202_p8 = scmp.ge.s32.totalorder %s1644_s20, 1  ;;  %p253_p9 = scmp.lt.s32.totalorder %s1644_s20, 4 }
  0x3a   : > { %s1197_s12 = sshll.u32 %s1762_s5, 6  ;;  %s1229_s6 = sshll.u32 %s1640_s19, 10 }
  0x3b   : > { %p1815_p11 = pnand %p1202_p8, %p253_p9  ;;  %s2224_s0 = sld [smem:[#allocation15_spill]] }
  0x3c   : > { %s194_s1 = scalar_lea.vmem [#allocation3], %s1197_s12  ;;  %s191_s11 = scalar_lea.sflag [#allocation4], %s1762_s5 }
  0x3d   : > { %s2223_s10 = scalar_select %p1815_p11, 1, 0 }
  0x3e   : > { %s203_s23 = sshll.u32 %s194_s1, 4  ;;  %s1826_s23 = int_to_ptr.vmem [resolvable:$true] %s203_s23 }
  0x41   : > { %s1824_s7 = scalar_lea.hbm %s2224_s0, %s1229_s6  ;;  %s1503_s13 = scalar_lea.hbm %s2224_s0, 3072 }
  0x42   : > { %s1498_s14 = scalar_lea.hbm %s1824_s7, 1024  ;;  %p1504_p10 = scmp.lt.u32.totalorder %s1824_s7, %s2224_s0 }
  0x43   : > { %p1499_p3 = scmp.ne.s32.totalorder %s1824_s7, %s1498_s14  ;;  %p1505_p12 = scmp.lt.u32.totalorder %s1503_s13, %s1498_s14 }
  0x44   : > { %p1507_p2 = scmp.lt.u32.totalorder %s1498_s14, %s1824_s7 }
  0x45   : > { %p1501_p6 = pnand %p1499_p3, %p1786_p1  ;;  %p1506_p0 = por %p1505_p12, %p1504_p10 }
  0x47   : > { %p1502_p7 = pneg %p1501_p6  ;;  %p1508_p4 = por %p1507_p2, %p1506_p0 }
  0x49   : > { %p1509_p5 = pnand %p1508_p4, %p1502_p7 }
  0x4b   : > { %1512 = shalt.err (!%p1509_p5)
}
  0x4c   : > { %s1513_s1 = scalar_lea.vmem %s1826_s23, 1024  ;;  %s1649_s24 = smov [#allocation3]  }
  0x4d   : > { %p1514_p8 = scmp.ne.s32.totalorder %s1826_s23, %s1513_s1  ;;  %s1518_s9 = sshll.u32 %s1649_s24, 4  ;;  %s1519_s9 = int_to_ptr.vmem [resolvable:$false] %s1518_s9 }
  0x4e   : > { %s1520_s12 = scalar_lea.vmem %s1519_s9, 2048  ;;  %p1521_p6 = scmp.lt.s32.totalorder %s1826_s23, %s1519_s9 }
  0x4f   : > { %p1516_p9 = pnand %p1514_p8, %p1786_p1  ;;  %p1522_p11 = scmp.lt.s32.totalorder %s1520_s12, %s1513_s1 }
  0x51   : > { %p1517_p3 = pneg %p1516_p9  ;;  %p1523_p10 = por %p1522_p11, %p1521_p6 }
  0x53   : > { %p1524_p12 = pnand %p1523_p10, %p1517_p3 }
  0x55   : > { %1527 = shalt.err (!%p1524_p12)
}
  0x56   : > { %s1650_s14 = smov 256   ;;  %s1651_s13 = smov 16  }
  0x57   : > { %1372 = dma.hbm_to_vmem [thread:$0]  (!%p1768_p13), %s1824_s7, 1024, %s1826_s23, %s191_s11, %s1650_s14, %s1650_s14, %s1651_s13  }
  0x58   : > { %s1357_s6 = smul.u32 48, %s1762_s5  ;;  %s1533_s7 = scalar_lea.hbm %s2204_s2, 2304 }
  0x59   : > { %s1358_s26 = smul.u32 768, %s1640_s19 }
  0x5a   : > { %s238_s12 = scalar_lea.vmem [#allocation8], %s1357_s6 }
  0x5b   : > { %s1857_s1 = scalar_lea.hbm %s2204_s2, %s1358_s26  ;;  %s245_s0 = sshll.u32 %s238_s12, 4  ;;  %s1859_s0 = int_to_ptr.vmem [resolvable:$true] %s245_s0 }
  0x5c   : > { %s1528_s29 = scalar_lea.hbm %s1857_s1, 768  ;;  %p1534_p2 = scmp.lt.u32.totalorder %s1857_s1, %s2204_s2 }
  0x5d   : > { %p1529_p11 = scmp.ne.s32.totalorder %s1857_s1, %s1528_s29  ;;  %p1535_p4 = scmp.lt.u32.totalorder %s1533_s7, %s1528_s29 }
  0x5e   : > { %p1537_p8 = scmp.lt.u32.totalorder %s1528_s29, %s1857_s1 }
  0x5f   : > { %p1531_p7 = pnand %p1529_p11, %p1786_p1  ;;  %p1536_p5 = por %p1535_p4, %p1534_p2 }
  0x61   : > { %p1532_p0 = pneg %p1531_p7  ;;  %p1538_p9 = por %p1537_p8, %p1536_p5 }
  0x63   : > { %p1539_p3 = pnand %p1538_p9, %p1532_p0 }
  0x65   : > { %1542 = shalt.err (!%p1539_p3)
}
  0x66   : > { %s1543_s13 = scalar_lea.vmem %s1859_s0, 768  ;;  %s1652_s6 = smov [#allocation8]  }
  0x67   : > { %p1544_p6 = scmp.ne.s32.totalorder %s1859_s0, %s1543_s13  ;;  %s1548_s26 = sshll.u32 %s1652_s6, 4  ;;  %s1549_s26 = int_to_ptr.vmem [resolvable:$false] %s1548_s26 }
  0x68   : > { %s1550_s24 = scalar_lea.vmem %s1549_s26, 1536  ;;  %p1551_p11 = scmp.lt.s32.totalorder %s1859_s0, %s1549_s26 }
  0x69   : > { %p1546_p10 = pnand %p1544_p6, %p1786_p1  ;;  %p1552_p7 = scmp.lt.s32.totalorder %s1550_s24, %s1543_s13 }
  0x6b   : > { %p1547_p12 = pneg %p1546_p10  ;;  %p1553_p2 = por %p1552_p7, %p1551_p11 }
  0x6d   : > { %p1554_p4 = pnand %p1553_p2, %p1547_p12 }
  0x6f   : > { %1557 = shalt.err (!%p1554_p4)
}
  0x70   : > { %s2225_s29 = smov 8   ;;  %s2226_s9 = smov 128  }
  0x71   : > { %1378 = dma.hbm_to_vmem [thread:$0]  (!%p1768_p13), %s1857_s1, 768, %s1859_s0, %s1780_s22, %s2226_s9, %s2226_s9, %s2225_s29  }
  0x72   : > { %p2227_p1 = scmp.ne.s32.totalorder %s2223_s10, 0 }
  0x73   : > { %s1889_s25 = sand.u32 (!%p2227_p1), 1, %s1628_s16   ;;  %p2228_p0 = scmp.ne.s32.totalorder (!%p2227_p1), %s2216_s27, 0 }
  0x74   : > { %257 = sbr.rel (%p2227_p1) target bundleno = 1287 (0x507), region = 32  ;;  %s1203_s12 = sshll.u32 (!%p2227_p1), %s1889_s25, 6 }
  0x75   : > { %s260_s23 = scalar_lea.sflag (!%p2227_p1), [#allocation4], %s1889_s25  ;;  %s1893_s5 = scalar_lea.vmem (!%p2227_p1), [#allocation3], %s1203_s12 }
  0x7b   : > { %1611 = dma.done.wait (%p2228_p0), %s260_s23, 1024  }
  0x7c   : > { %1613 = vsyncadd (%p2228_p0), %s260_s23, 4294966272  ;;  %s268_s0 = sand.u32 1, %s1725_s21   ;;  %s1359_s8 = smul.u32 224, %s1889_s25 }
  0x7d   : > { %s269_s22 = scalar_lea.sflag [#allocation7], %s268_s0 }
  0x7e   : > { %s1901_s10 = scalar_lea.vmem [#allocation6], %s1359_s8 }
  0x7f   : > { %1615 = dma.done.wait (%p2228_p0), %s269_s22, 4352  }
  0x80   : > { %1617 = vsyncadd (%p2228_p0), %s269_s22, 4294962944  ;;  %v1653_v0 = vmov 0.0|0.0   ;;  %v342_v1 = vld [vmem:[%s1901_s10] sm:$0xff]  ;;  %v343_v2 = vld [vmem:[%s1901_s10 + $0x8] sm:$0xff]  ;;  %vm370_vm0 = vcmask 728064   ;;  %vm383_vm1 = vcmask 1040384  }
  0x81   : > { %1292 = vmatprep.subr.bf16.mxu0 %v1653_v0  ;;  %1335 = vmatprep.subr.bf16.mxu1 %v1653_v0  ;;  %v344_v3 = vld [vmem:[%s1901_s10 + $0x10] sm:$0xff]  ;;  %v1293_v4 = vpack.c.bf16 %v343_v2, %v342_v1  ;;  %v345_v5 = vld [vmem:[%s1901_s10 + $0x18] sm:$0xff]  ;;  %v346_v7 = vld [vmem:[%s1901_s10 + $0x20] sm:$0xff]  ;;  %vm1654_vm2 = vmmov 1   ;;  %s1204_s21 = sshll.u32 %s1889_s25, 5  ;;  %s1655_s1 = smov 64  }
  0x82   : > { %v1296_v6 = vpack.c.bf16 %v345_v5, %v344_v3  ;;  %v347_v8 = vld [vmem:[%s1901_s10 + $0x28] sm:$0xff]  ;;  %v348_v10 = vld [vmem:[%s1901_s10 + $0x30] sm:$0xff]  ;;  %v349_v11 = vld [vmem:[%s1901_s10 + $0x38] sm:$0xff]  ;;  %s1964_s27 = scalar_lea.vmem [#allocation9], %s1204_s21  ;;  %s1656_s7 = smov 32   ;;  %vm548_vm4 = vcmask 359424  }
  0x83   : > { %1294 = vmatpush1.bf16.msra.mxu0 %v1293_v4  ;;  %v1299_v9 = vpack.c.bf16 %v347_v8, %v346_v7  ;;  %v335_v12 = vld [vmem:[%s1893_s5 + $0x8] sm:$0xff]  ;;  %v1302_v13 = vpack.c.bf16 %v349_v11, %v348_v10  ;;  %v350_v14 = vld [vmem:[%s1901_s10 + $0x40] sm:$0xff]  ;;  %v352_v17 = vld [vmem:[%s1901_s10 + $0x50] sm:$0xff]  ;;  %s1657_s11 = smov 16   ;;  %s1360_s14 = smul.u32 48, %s1889_s25  ;;  %vm551_vm5 = vcmask 357376  }
  0x84   : > { %1295 = vmatprep.subr.bf16.mxu0 %v1653_v0  ;;  %1208 = vmatprep.mubr.msk.f32.mxu0 %vm370_vm0, %v335_v12  ;;  %v351_v15 = vld [vmem:[%s1901_s10 + $0x48] sm:$0xff]  ;;  %v353_v18 = vld [vmem:[%s1901_s10 + $0x58] sm:$0xff]  ;;  %v354_v20 = vld [vmem:[%s1901_s10 + $0x60] sm:$0xff]  ;;  %vm593_vm6 = vcmask 1043456   ;;  %vm1659_vm8 = vmmov 0   ;;  %s1660_s6 = smov 3  }
  0x85   : > { %v1305_v16 = vpack.c.bf16 %v351_v15, %v350_v14  ;;  %v1308_v19 = vpack.c.bf16 %v353_v18, %v352_v17  ;;  %v355_v21 = vld [vmem:[%s1901_s10 + $0x68] sm:$0xff]  ;;  %v356_v23 = vld [vmem:[%s1901_s10 + $0x70] sm:$0xff]  ;;  %v357_v24 = vld [vmem:[%s1901_s10 + $0x78] sm:$0xff]  ;;  %s1991_s13 = scalar_lea.vmem [#allocation8], %s1360_s14  ;;  %s1661_s26 = smov 25   ;;  %vm561_vm9 = vcmask 154648  }
  0x86   : > { %v1311_v22 = vpack.c.bf16 %v355_v21, %v354_v20  ;;  %v1314_v25 = vpack.c.bf16 %v357_v24, %v356_v23  ;;  %v358_v26 = vld [vmem:[%s1901_s10 + $0x80] sm:$0xff]  ;;  %v359_v27 = vld [vmem:[%s1901_s10 + $0x88] sm:$0xff]  ;;  %v360_v29 = vld [vmem:[%s1901_s10 + $0x90] sm:$0xff]  ;;  %v1658_v20 = vmov 0.0   ;;  %vm572_vm10 = vcmask 335048   ;;  %s1662_s24 = smov 112  }
  0x87   : > { %1297 = vmatpush1.bf16.msra.mxu0 %v1296_v6  ;;  %v1317_v28 = vpack.c.bf16 %v359_v27, %v358_v26  ;;  %v361_v30 = vld [vmem:[%s1901_s10 + $0x98] sm:$0xff]  ;;  %v362_v32 = vld [vmem:[%s1901_s10 + $0xa0] sm:$0xff]  ;;  %v363_v33 = vld [vmem:[%s1901_s10 + $0xa8] sm:$0xff]  ;;  %549 = vst.msk [vmem:[#allocation2] sm:$0xff] %vm548_vm4, %v1658_v20  ;;  %1262 = vmatprep.mubr.msk.f32.mxu1 %vm1659_vm8, %v1658_v20  ;;  %vm680_vm11 = vcmask 1046528   ;;  %vm694_vm12 = vcmask 1045504  }
  0x88   : > { %1298 = vmatprep.subr.bf16.mxu0 %v1653_v0  ;;  %v1320_v31 = vpack.c.bf16 %v361_v30, %v360_v29  ;;  %v1323_v34 = vpack.c.bf16 %v363_v33, %v362_v32  ;;  %v364_v35 = vld [vmem:[%s1901_s10 + $0xb0] sm:$0xff]  ;;  %v365_v36 = vld [vmem:[%s1901_s10 + $0xb8] sm:$0xff]  ;;  %v366_v38 = vld [vmem:[%s1901_s10 + $0xc0] sm:$0xff]  ;;  %550 = vst.msk [vmem:[#allocation2 + $0x8] sm:$0xff] %vm548_vm4, %v1658_v20  ;;  %vm708_vm13 = vcmask 1044480   ;;  %vm735_vm14 = vcmask 1042432  }
  0x89   : > { %v1326_v37 = vpack.c.bf16 %v365_v36, %v364_v35  ;;  %v367_v39 = vld [vmem:[%s1901_s10 + $0xc8] sm:$0xff]  ;;  %v368_v41 = vld [vmem:[%s1901_s10 + $0xd0] sm:$0xff]  ;;  %v369_v42 = vld [vmem:[%s1901_s10 + $0xd8] sm:$0x1]  ;;  %552 = vst.msk [vmem:[#allocation2 + $0x10] sm:$0x3f] %vm551_vm5, %v1658_v20 }
  0x8a   : > { %v1329_v40 = vpack.c.bf16 %v367_v39, %v366_v38  ;;  %v1332_v43 = vpack.c.bf16 %v369_v42, %v368_v41  ;;  %vm1333_vm3 = vmpackc.low %vm383_vm1, %vm1654_vm2  ;;  %v334_v44 = vld [vmem:[%s1893_s5] sm:$0xff]  ;;  %v337_v45 = vld [vmem:[%s1893_s5 + $0x18] sm:$0xff]  ;;  %vm749_vm15 = vcmask 1041408   ;;  %s1663_s29 = smov 96   ;;  %s1664_s9 = smov 80  }
  0x8b   : > { %1300 = vmatpush1.bf16.msra.mxu0 %v1299_v9  ;;  %v336_v46 = vld [vmem:[%s1893_s5 + $0x10] sm:$0xff]  ;;  %v339_v47 = vld [vmem:[%s1893_s5 + $0x28] sm:$0xff]  ;;  %v338_v48 = vld [vmem:[%s1893_s5 + $0x20] sm:$0xff]  ;;  %s1665_s12 = smov 48   ;;  %s1019_s23 = sshll.u32 %s1964_s27, 4  ;;  %s2135_s23 = int_to_ptr.vmem [resolvable:$true] %s1019_s23 }
  0x8c   : > { %1301 = vmatprep.subr.bf16.mxu0 %v1653_v0  ;;  %v341_v49 = vld [vmem:[%s1893_s5 + $0x38] sm:$0xff]  ;;  %v340_v50 = vld [vmem:[%s1893_s5 + $0x30] sm:$0xff]  ;;  %vm2017_vm7 = vmpackc.low %vm593_vm6, %vm1654_vm2  ;;  %s1231_s5 = sshll.u32 %s1636_s18, 9  ;;  %s995_s10 = scalar_lea.sflag [#allocation5], %s1889_s25 }
  0x8d   : > { %v579_v26 = vld [vmem:[%s1991_s13 + $0x8] sm:$0xff]  ;;  %v580_v32 = vld [vmem:[%s1991_s13 + $0x10] sm:$0xff]  ;;  %v581_v33 = vld [vmem:[%s1991_s13 + $0x18] sm:$0xff]  ;;  %s2141_s22 = scalar_lea.hbm %s2205_s3, %s1231_s5  ;;  %s1558_s21 = scalar_lea.vmem %s2135_s23, 512 }
  0x8e   : > { %v2011_v35 = vld [vmem:[%s1991_s13 + $0x20] sm:$0xff]  ;;  %v583_v36 = vld [vmem:[%s1991_s13 + $0x28] sm:$0xf]  ;;  %p1559_p13 = scmp.ne.s32.totalorder %s2135_s23, %s1558_s21  ;;  %p2231_p5 = scmp.ne.s32.totalorder %s2217_s28, 0 }
  0x8f   : > { %1303 = vmatpush1.bf16.msra.mxu0 %v1302_v13 }
  0x90   : > { %1304 = vmatprep.subr.bf16.mxu0 %v1653_v0  ;;  %p1560_p8 = pnand %p1559_p13, %p2231_p5 }
  0x92   : > { %p1561_p9 = pneg %p1560_p8 }
  0x93   : > { %1306 = vmatpush1.bf16.msra.mxu0 %v1305_v16 }
  0x94   : > { %1307 = vmatprep.subr.bf16.mxu0 %v1653_v0 }
  0x97   : > { %1309 = vmatpush1.bf16.msra.mxu0 %v1308_v19 }
  0x98   : > { %1310 = vmatprep.subr.bf16.mxu0 %v1653_v0 }
  0x9b   : > { %1312 = vmatpush1.bf16.msra.mxu0 %v1311_v22 }
  0x9c   : > { %1313 = vmatprep.subr.bf16.mxu0 %v1653_v0 }
  0x9f   : > { %1315 = vmatpush1.bf16.msra.mxu0 %v1314_v25  ;;  %v578_v25 = vld [vmem:[%s1991_s13] sm:$0xff] }
  0xa0   : > { %1316 = vmatprep.subr.bf16.mxu0 %v1653_v0  ;;  %v1995_v27 = vpack.c.bf16 %v579_v26, %v578_v25 }
  0xa2   : > { %1337 = vmatpush3.bf16.msra.mxu1 %v1995_v27 }
  0xa3   : > { %1318 = vmatpush1.bf16.msra.mxu0 %v1317_v28  ;;  %1338 = vmatprep.subr.bf16.mxu1 %v1653_v0 }
  0xa4   : > { %1319 = vmatprep.subr.bf16.mxu0 %v1653_v0 }
  0xa7   : > { %1321 = vmatpush1.bf16.msra.mxu0 %v1320_v31 }
  0xa8   : > { %1322 = vmatprep.subr.bf16.mxu0 %v1653_v0 }
  0xab   : > { %1324 = vmatpush1.bf16.msra.mxu0 %v1323_v34  ;;  %v2005_v34 = vpack.c.bf16 %v581_v33, %v580_v32 }
  0xac   : > { %1325 = vmatprep.subr.bf16.mxu0 %v1653_v0 }
  0xad   : > { %1340 = vmatpush3.bf16.msra.mxu1 %v2005_v34 }
  0xae   : > { %1341 = vmatprep.subr.bf16.mxu1 %v1653_v0 }
  0xaf   : > { %1327 = vmatpush1.bf16.msra.mxu0 %v1326_v37  ;;  %v1342_v37 = vpack.c.bf16 %v583_v36, %v2011_v35 }
  0xb0   : > { %1328 = vmatprep.subr.bf16.mxu0 %v1653_v0 }
  0xb1   : > { %1344 = vmatpush3.bf16.msk.msra.mxu1 %vm2017_vm7, %v1342_v37 }
  0xb2   : > { %1345 = vmatprep.subr.bf16.mxu1 %v1653_v0 }
  0xb3   : > { %1330 = vmatpush1.bf16.msra.mxu0 %v1329_v40 }
  0xb4   : > { %1331 = vmatprep.subr.bf16.mxu0 %v1653_v0 }
  0xb7   : > { %1334 = vmatpush1.bf16.msk.msra.mxu0 %vm1333_vm3, %v1332_v43 }
  0xba   : > { %452 = vmatmul.mubr.f32.vlgmr.msra.gmra.mrb[0].mxu0 %v334_v44 }
  0xbb   : > { %1209 = vmatprep.mubr.msk.f32.mxu0 %vm370_vm0, %v337_v45 }
  0xbe   : > { %457 = vmatmul.mubr.f32.gmra.mrb[2].mxu0 %v336_v46 }
  0xbf   : > { %1210 = vmatprep.mubr.msk.f32.mxu0 %vm370_vm0, %v339_v47 }
  0xc2   : > { %462 = vmatmul.mubr.f32.gmra.mrb[4].mxu0 %v338_v48 }
  0xc3   : > { %1211 = vmatprep.mubr.msk.f32.mxu0 %vm370_vm0, %v341_v49 }
  0xc6   : > { %467 = vmatmul.mubr.f32.gmra.mrb[6].mxu0 %v340_v50 }
 0x18d   : > { %v453_v51 = vpop.f32.mrb[0].mxu0 }
 0x18e   : > { %v472_v52 = vmax.f32 %v453_v51, 0.0  ;;  %v455_v53 = vpop.f32.mrb[1].mxu0 }
 0x190   : > { %476 = vst [vmem:[%s1964_s27] sm:$0xff] %v472_v52  ;;  %480 = vrot.lane.b32.xlu0 %v472_v52, %s1655_s1 }
 0x191   : > { %v458_v54 = vpop.f32.mrb[2].mxu0 }
 0x192   : > { %v473_v55 = vmax.f32 %v458_v54, 0.0  ;;  %v460_v56 = vpop.f32.mrb[3].mxu0 }
 0x194   : > { %477 = vst [vmem:[%s1964_s27 + $0x8] sm:$0xff] %v473_v55  ;;  %482 = vrot.lane.b32.xlu0 %v473_v55, %s1655_s1 }
 0x195   : > { %v463_v57 = vpop.f32.mrb[4].mxu0 }
 0x196   : > { %v474_v58 = vmax.f32 %v463_v57, 0.0  ;;  %v465_v59 = vpop.f32.mrb[5].mxu0 }
 0x198   : > { %478 = vst [vmem:[%s1964_s27 + $0x10] sm:$0xff] %v474_v58  ;;  %484 = vrot.lane.b32.xlu1 %v474_v58, %s1655_s1 }
 0x199   : > { %v468_v60 = vpop.f32.mrb[6].mxu0 }
 0x19a   : > { %v475_v61 = vmax.f32 %v468_v60, 0.0  ;;  %v470_v62 = vpop.f32.mrb[7].mxu0 }
 0x19c   : > { %479 = vst [vmem:[%s1964_s27 + $0x18] sm:$0xff] %v475_v61  ;;  %486 = vrot.lane.b32.xlu1 %v475_v61, %s1655_s1 }
 0x202   : > { %v481_v63 = vpop.permute.xlu0 %480 }
 0x203   : > { %v488_v1 = vmax.f32 %v472_v52, %v481_v63  ;;  %v492_v2 = vadd.f32 %v481_v63, %v472_v52 }
 0x205   : > { %508 = vrot.lane.b32.xlu0 %v492_v2, %s1656_s7  ;;  %496 = vrot.lane.b32.xlu1 %v488_v1, %s1656_s7 }
 0x206   : > { %v483_v3 = vpop.permute.xlu0 %482 }
 0x207   : > { %v489_v4 = vmax.f32 %v473_v55, %v483_v3  ;;  %v493_v5 = vadd.f32 %v483_v3, %v473_v55  ;;  %v806_v3 = vld [vmem:[%s1991_s13 + $0x28] sm:$0xf] }
 0x209   : > { %510 = vrot.lane.b32.xlu0 %v493_v5, %s1656_s7  ;;  %498 = vrot.lane.b32.xlu1 %v489_v4, %s1656_s7 }
 0x20a   : > { %v485_v6 = vpop.permute.xlu1 %484 }
 0x20b   : > { %v490_v7 = vmax.f32 %v474_v58, %v485_v6  ;;  %v494_v8 = vadd.f32 %v485_v6, %v474_v58 }
 0x20d   : > { %512 = vrot.lane.b32.xlu0 %v494_v8, %s1656_s7  ;;  %500 = vrot.lane.b32.xlu1 %v490_v7, %s1656_s7 }
 0x20e   : > { %v487_v9 = vpop.permute.xlu1 %486 }
 0x20f   : > { %v491_v10 = vmax.f32 %v475_v61, %v487_v9  ;;  %v495_v11 = vadd.f32 %v487_v9, %v475_v61 }
 0x211   : > { %514 = vrot.lane.b32.xlu0 %v495_v11, %s1656_s7  ;;  %502 = vrot.lane.b32.xlu1 %v491_v10, %s1656_s7 }
 0x277   : > { %v509_v12 = vpop.permute.xlu0 %508  ;;  %v497_v13 = vpop.permute.xlu1 %496 }
 0x278   : > { %v516_v14 = vadd.f32 %v509_v12, %v492_v2  ;;  %v504_v15 = vmax.f32 %v488_v1, %v497_v13 }
 0x27a   : > { %532 = vrot.lane.b32.xlu0 %v516_v14, %s1657_s11  ;;  %520 = vrot.lane.b32.xlu1 %v504_v15, %s1657_s11 }
 0x27b   : > { %v511_v16 = vpop.permute.xlu0 %510  ;;  %v499_v17 = vpop.permute.xlu1 %498 }
 0x27c   : > { %v517_v18 = vadd.f32 %v511_v16, %v493_v5  ;;  %v505_v19 = vmax.f32 %v489_v4, %v499_v17 }
 0x27e   : > { %534 = vrot.lane.b32.xlu0 %v517_v18, %s1657_s11  ;;  %522 = vrot.lane.b32.xlu1 %v505_v19, %s1657_s11 }
 0x27f   : > { %v513_v21 = vpop.permute.xlu0 %512  ;;  %v501_v22 = vpop.permute.xlu1 %500 }
 0x280   : > { %v518_v23 = vadd.f32 %v513_v21, %v494_v8  ;;  %v506_v24 = vmax.f32 %v490_v7, %v501_v22  ;;  %v1352_v8 = vpack.c.bf16 %v806_v3, %v2011_v35 }
 0x282   : > { %536 = vrot.lane.b32.xlu0 %v518_v23, %s1657_s11  ;;  %524 = vrot.lane.b32.xlu1 %v506_v24, %s1657_s11 }
 0x283   : > { %v515_v28 = vpop.permute.xlu0 %514  ;;  %v503_v29 = vpop.permute.xlu1 %502 }
 0x284   : > { %v519_v30 = vadd.f32 %v515_v28, %v495_v11  ;;  %v507_v31 = vmax.f32 %v491_v10, %v503_v29 }
 0x286   : > { %538 = vrot.lane.b32.xlu0 %v519_v30, %s1657_s11  ;;  %526 = vrot.lane.b32.xlu1 %v507_v31, %s1657_s11 }
 0x2ec   : > { %v533_v39 = vpop.permute.xlu0 %532  ;;  %v521_v40 = vpop.permute.xlu1 %520 }
 0x2ed   : > { %v540_v41 = vadd.f32 %v533_v39, %v516_v14  ;;  %v528_v42 = vmax.f32 %v504_v15, %v521_v40 }
 0x2ef   : > { %v544_v43 = vmul.f32 0.125, %v540_v41  ;;  %555 = vrot.lane.b32.xlu0 %v528_v42, %s1660_s6 }
 0x2f0   : > { %v535_v44 = vpop.permute.xlu0 %534  ;;  %v523_v45 = vpop.permute.xlu1 %522 }
 0x2f1   : > { %v541_v46 = vadd.f32 %v535_v44, %v517_v18  ;;  %v529_v47 = vmax.f32 %v505_v19, %v523_v45  ;;  %566 = vrot.lane.b32.xlu1 %v544_v43, %s1661_s26 }
 0x2f3   : > { %v545_v48 = vmul.f32 0.125, %v541_v46  ;;  %557 = vrot.lane.b32.xlu0 %v529_v47, %s1660_s6 }
 0x2f4   : > { %v537_v49 = vpop.permute.xlu0 %536  ;;  %v525_v50 = vpop.permute.xlu1 %524 }
 0x2f5   : > { %v542_v51 = vadd.f32 %v537_v49, %v518_v23  ;;  %v530_v52 = vmax.f32 %v506_v24, %v525_v50  ;;  %568 = vrot.lane.b32.xlu1 %v545_v48, %s1661_s26 }
 0x2f7   : > { %v546_v53 = vmul.f32 0.125, %v542_v51  ;;  %780 = vrot.lane.b32.xlu0 %v530_v52, %s1660_s6 }
 0x2f8   : > { %v539_v54 = vpop.permute.xlu0 %538  ;;  %v527_v55 = vpop.permute.xlu1 %526 }
 0x2f9   : > { %v543_v56 = vadd.f32 %v539_v54, %v519_v30  ;;  %v531_v57 = vmax.f32 %v507_v31, %v527_v55  ;;  %790 = vrot.lane.b32.xlu1 %v546_v53, %s1661_s26 }
 0x2fb   : > { %v547_v58 = vmul.f32 0.125, %v543_v56  ;;  %782 = vrot.lane.b32.xlu0 %v531_v57, %s1660_s6 }
 0x2fd   : > { %792 = vrot.lane.b32.xlu1 %v547_v58, %s1661_s26 }
 0x361   : > { %v556_v59 = vpop.permute.xlu0 %555 }
 0x362   : > { %562 = vst.msk [vmem:[#allocation2 + $0x3] sm:$0xff] %vm561_vm9, %v556_v59 }
 0x363   : > { %v567_v60 = vpop.permute.xlu1 %566 }
 0x364   : > { %573 = vst.msk [vmem:[#allocation2 + $0x3] sm:$0xff] %vm572_vm10, %v567_v60 }
 0x365   : > { %v558_v61 = vpop.permute.xlu0 %557 }
 0x366   : > { %563 = vst.msk [vmem:[#allocation2 + $0xb] sm:$0xff] %vm561_vm9, %v558_v61 }
 0x367   : > { %v569_v62 = vpop.permute.xlu1 %568 }
 0x368   : > { %574 = vst.msk [vmem:[#allocation2 + $0xb] sm:$0xff] %vm572_vm10, %v569_v62 }
 0x369   : > { %v781_v63 = vpop.permute.xlu0 %780 }
 0x36b   : > { %v791_v1 = vpop.permute.xlu1 %790  ;;  %v575_v2 = vld [vmem:[#allocation2] sm:$0xff] }
 0x36c   : > { %1263 = vmatmul.mubr.msk.f32.vlgmr.msra.gmra.mrb[0].mxu1 %vm548_vm4, %v575_v2 }
 0x36d   : > { %1347 = vmatpush3.bf16.msra.mxu1 %v1995_v27  ;;  %1265 = vmatprep.mubr.msk.f32.mxu1 %vm1659_vm8, %v1658_v20  ;;  %v783_v4 = vpop.permute.xlu0 %782 }
 0x36e   : > { %1348 = vmatprep.subr.bf16.mxu1 %v1653_v0 }
 0x36f   : > { %v793_v5 = vpop.permute.xlu1 %792  ;;  %v576_v6 = vld [vmem:[#allocation2 + $0x8] sm:$0xff]  ;;  %v577_v7 = vld [vmem:[#allocation2 + $0x10] sm:$0x3f] }
 0x370   : > { %1266 = vmatmul.mubr.msk.f32.gmra.mrb[2].mxu1 %vm548_vm4, %v576_v6  ;;  %786 = vst.msk [vmem:[#allocation2 + $0x3] sm:$0xff] %vm561_vm9, %v781_v63  ;;  %787 = vst.msk [vmem:[#allocation2 + $0xb] sm:$0xff] %vm561_vm9, %v783_v4 }
 0x371   : > { %796 = vst.msk [vmem:[#allocation2 + $0x3] sm:$0xff] %vm572_vm10, %v791_v1  ;;  %1350 = vmatpush3.bf16.msra.mxu1 %v2005_v34  ;;  %1268 = vmatprep.mubr.msk.f32.mxu1 %vm1659_vm8, %v1658_v20  ;;  %797 = vst.msk [vmem:[#allocation2 + $0xb] sm:$0xff] %vm572_vm10, %v793_v5 }
 0x372   : > { %1351 = vmatprep.subr.bf16.mxu1 %v1653_v0 }
 0x374   : > { %1269 = vmatmul.mubr.msk.f32.gmra.mrb[4].mxu1 %vm548_vm4, %v577_v7 }
 0x375   : > { %1354 = vmatpush3.bf16.msk.msra.mxu1 %vm2017_vm7, %v1352_v8  ;;  %1283 = vmatprep.mubr.msk.f32.mxu1 %vm1659_vm8, %v1658_v20 }
 0x378   : > { %v798_v9 = vld [vmem:[#allocation2] sm:$0xff]  ;;  %v799_v10 = vld [vmem:[#allocation2 + $0x8] sm:$0xff]  ;;  %v800_v0 = vld [vmem:[#allocation2 + $0x10] sm:$0x3f] }
 0x379   : > { %1284 = vmatmul.mubr.msk.f32.vlgmr.msra.gmra.mrb[6].mxu1 %vm548_vm4, %v798_v9 }
 0x37a   : > { %1286 = vmatprep.mubr.msk.f32.mxu1 %vm1659_vm8, %v1658_v20 }
 0x37d   : > { %1287 = vmatmul.mubr.msk.f32.gmra.mrb[8].mxu1 %vm548_vm4, %v799_v10 }
 0x37e   : > { %1289 = vmatprep.mubr.msk.f32.mxu1 %vm1659_vm8, %v1658_v20 }
 0x381   : > { %1290 = vmatmul.mubr.msk.f32.gmra.mrb[10].mxu1 %vm548_vm4, %v800_v0 }
 0x43f   : > { %v2058_v11 = vpop.f32.mrb[0].mxu1 }
 0x440   : > { %v1264_v12 = vpop.f32.mrb[1].mxu1  ;;  %v681_v14 = vrot.slane %v2058_v11, 1  ;;  %v695_v15 = vrot.slane %v2058_v11, 2  ;;  %v709_v16 = vrot.slane %v2058_v11, 3  ;;  %v722_v17 = vrot.slane %v2058_v11, 4 }
 0x441   : > { %v736_v23 = vrot.slane %v2058_v11, 5  ;;  %v750_v25 = vrot.slane %v2058_v11, 6 }
 0x443   : > { %v2060_v13 = vpop.f32.mrb[2].mxu1 }
 0x444   : > { %v1267_v18 = vpop.f32.mrb[3].mxu1  ;;  %v682_v19 = vrot.slane %v2060_v13, 1  ;;  %v696_v20 = vrot.slane %v2060_v13, 2  ;;  %v710_v21 = vrot.slane %v2060_v13, 3  ;;  %v723_v22 = vrot.slane %v2060_v13, 4 }
 0x445   : > { %v737_v24 = vrot.slane %v2060_v13, 5  ;;  %v751_v26 = vrot.slane %v2060_v13, 6 }
 0x446   : > { %v683_v27 = vsel %vm680_vm11, %v681_v14, %v682_v19  ;;  %v697_v28 = vsel %vm694_vm12, %v695_v15, %v696_v20  ;;  %v711_v29 = vsel %vm708_vm13, %v709_v16, %v710_v21  ;;  %v724_v30 = vsel %vm593_vm6, %v722_v17, %v723_v22 }
 0x447   : > { %686 = vrot.lane.b32.xlu0 %v683_v27, %s1662_s24  ;;  %v673_v31 = vpop.f32.mrb[4].mxu1  ;;  %v738_v32 = vsel %vm735_vm14, %v736_v23, %v737_v24  ;;  %v752_v33 = vsel %vm749_vm15, %v750_v25, %v751_v26 }
 0x448   : > { %v1270_v34 = vpop.f32.mrb[5].mxu1  ;;  %v684_v35 = vrot.slane %v673_v31, 1  ;;  %v698_v36 = vrot.slane %v673_v31, 2  ;;  %v712_v37 = vrot.slane %v673_v31, 3  ;;  %v725_v38 = vrot.slane %v673_v31, 4 }
 0x449   : > { %v739_v39 = vrot.slane %v673_v31, 5  ;;  %v753_v40 = vrot.slane %v673_v31, 6 }
 0x44a   : > { %v685_v41 = vsel %vm680_vm11, %v682_v19, %v684_v35  ;;  %v699_v42 = vsel %vm694_vm12, %v696_v20, %v698_v36  ;;  %v713_v43 = vsel %vm708_vm13, %v710_v21, %v712_v37  ;;  %v726_v44 = vsel %vm593_vm6, %v723_v22, %v725_v38 }
 0x44b   : > { %700 = vrot.lane.b32.xlu0 %v697_v28, %s1663_s29  ;;  %688 = vrot.lane.b32.xlu1 %v685_v41, %s1662_s24  ;;  %v740_v45 = vsel %vm735_vm14, %v737_v24, %v739_v39  ;;  %v754_v46 = vsel %vm749_vm15, %v751_v26, %v753_v40 }
 0x44c   : > { %v2089_v47 = vpop.f32.mrb[6].mxu1 }
 0x44d   : > { %v1285_v48 = vpop.f32.mrb[7].mxu1  ;;  %v902_v50 = vrot.slane %v2089_v47, 1  ;;  %v915_v51 = vrot.slane %v2089_v47, 2  ;;  %v928_v52 = vrot.slane %v2089_v47, 3  ;;  %v941_v53 = vrot.slane %v2089_v47, 4 }
 0x44e   : > { %v954_v59 = vrot.slane %v2089_v47, 5  ;;  %v967_v61 = vrot.slane %v2089_v47, 6 }
 0x44f   : > { %714 = vrot.lane.b32.xlu0 %v711_v29, %s1664_s9  ;;  %702 = vrot.lane.b32.xlu1 %v699_v42, %s1663_s29 }
 0x450   : > { %v2093_v49 = vpop.f32.mrb[8].mxu1 }
 0x451   : > { %v1288_v54 = vpop.f32.mrb[9].mxu1  ;;  %v903_v55 = vrot.slane %v2093_v49, 1  ;;  %v916_v56 = vrot.slane %v2093_v49, 2  ;;  %v929_v57 = vrot.slane %v2093_v49, 3  ;;  %v942_v58 = vrot.slane %v2093_v49, 4 }
 0x452   : > { %v955_v60 = vrot.slane %v2093_v49, 5  ;;  %v968_v62 = vrot.slane %v2093_v49, 6 }
 0x453   : > { %727 = vrot.lane.b32.xlu0 %v724_v30, %s1655_s1  ;;  %716 = vrot.lane.b32.xlu1 %v713_v43, %s1664_s9  ;;  %v904_v63 = vsel %vm680_vm11, %v902_v50, %v903_v55  ;;  %v917_v1 = vsel %vm694_vm12, %v915_v51, %v916_v56  ;;  %v930_v2 = vsel %vm708_vm13, %v928_v52, %v929_v57 }
 0x454   : > { %v895_v3 = vpop.f32.mrb[10].mxu1  ;;  %v943_v4 = vsel %vm593_vm6, %v941_v53, %v942_v58  ;;  %v956_v5 = vsel %vm735_vm14, %v954_v59, %v955_v60  ;;  %v969_v6 = vsel %vm749_vm15, %v967_v61, %v968_v62 }
 0x455   : > { %v1291_v7 = vpop.f32.mrb[11].mxu1  ;;  %v905_v8 = vrot.slane %v895_v3, 1  ;;  %v918_v9 = vrot.slane %v895_v3, 2  ;;  %v931_v10 = vrot.slane %v895_v3, 3  ;;  %v944_v0 = vrot.slane %v895_v3, 4 }
 0x456   : > { %v957_v12 = vrot.slane %v895_v3, 5  ;;  %v970_v14 = vrot.slane %v895_v3, 6 }
 0x457   : > { %741 = vrot.lane.b32.xlu0 %v738_v32, %s1665_s12  ;;  %729 = vrot.lane.b32.xlu1 %v726_v44, %s1655_s1  ;;  %v906_v15 = vsel %vm680_vm11, %v903_v55, %v905_v8  ;;  %v919_v16 = vsel %vm694_vm12, %v916_v56, %v918_v9  ;;  %v932_v17 = vsel %vm708_vm13, %v929_v57, %v931_v10 }
 0x458   : > { %v945_v18 = vsel %vm593_vm6, %v942_v58, %v944_v0  ;;  %v958_v19 = vsel %vm735_vm14, %v955_v60, %v957_v12  ;;  %v971_v20 = vsel %vm749_vm15, %v968_v62, %v970_v14 }
 0x45b   : > { %755 = vrot.lane.b32.xlu0 %v752_v33, %s1656_s7  ;;  %743 = vrot.lane.b32.xlu1 %v740_v45, %s1665_s12 }
 0x45f   : > { %757 = vrot.lane.b32.xlu1 %v754_v46, %s1656_s7  ;;  %907 = vrot.lane.b32.xlu0 %v904_v63, %s1662_s24 }
 0x463   : > { %920 = vrot.lane.b32.xlu0 %v917_v1, %s1663_s29  ;;  %909 = vrot.lane.b32.xlu1 %v906_v15, %s1662_s24 }
 0x467   : > { %933 = vrot.lane.b32.xlu0 %v930_v2, %s1664_s9  ;;  %922 = vrot.lane.b32.xlu1 %v919_v16, %s1663_s29 }
 0x46b   : > { %946 = vrot.lane.b32.xlu0 %v943_v4, %s1655_s1  ;;  %935 = vrot.lane.b32.xlu1 %v932_v17, %s1664_s9 }
 0x46f   : > { %959 = vrot.lane.b32.xlu0 %v956_v5, %s1665_s12  ;;  %948 = vrot.lane.b32.xlu1 %v945_v18, %s1655_s1  ;;  %s1666_s1 = smov [#allocation9]  }
 0x473   : > { %972 = vrot.lane.b32.xlu0 %v969_v6, %s1656_s7  ;;  %961 = vrot.lane.b32.xlu1 %v958_v19, %s1665_s12 }
 0x477   : > { %974 = vrot.lane.b32.xlu1 %v971_v20, %s1656_s7  ;;  %s1562_s7 = sshll.u32 %s1666_s1, 4  ;;  %s1563_s7 = int_to_ptr.vmem [resolvable:$false] %s1562_s7 }
 0x478   : > { %s1564_s27 = scalar_lea.vmem %s1563_s7, 1024  ;;  %p1565_p3 = scmp.lt.s32.totalorder %s2135_s23, %s1563_s7 }
 0x479   : > { %p1566_p6 = scmp.lt.s32.totalorder %s1564_s27, %s1558_s21 }
 0x47b   : > { %p1567_p10 = por %p1566_p6, %p1565_p3 }
 0x47d   : > { %p1568_p12 = pnand %p1567_p10, %p1561_p9 }
 0x47f   : > { %1571 = shalt.err (!%p1568_p12)
}
 0x480   : > { %s1572_s11 = scalar_lea.hbm %s2141_s22, 512  ;;  %s1576_s6 = scalar_lea.hbm %s2205_s3, 1536 }
 0x481   : > { %p1573_p11 = scmp.ne.s32.totalorder %s2141_s22, %s1572_s11  ;;  %p1577_p4 = scmp.lt.u32.totalorder %s2141_s22, %s2205_s3 }
 0x482   : > { %p1578_p1 = scmp.lt.u32.totalorder %s1576_s6, %s1572_s11  ;;  %p1580_p13 = scmp.lt.u32.totalorder %s1572_s11, %s2141_s22 }
 0x483   : > { %p1574_p7 = pnand %p1573_p11, %p2231_p5 }
 0x484   : > { %p1579_p0 = por %p1578_p1, %p1577_p4 }
 0x485   : > { %p1575_p2 = pneg %p1574_p7 }
 0x486   : > { %p1581_p8 = por %p1580_p13, %p1579_p0 }
 0x488   : > { %p1582_p9 = pnand %p1581_p8, %p1575_p2 }
 0x48a   : > { %1585 = shalt.err (!%p1582_p9)
}
 0x48b   : > { %s1667_s29 = smov 128   ;;  %s1668_s9 = smov 8   ;;  %vm775_vm0 = vcmask 130048  }
 0x48c   : > { %1367 = dma.vmem_to_hbm [thread:$0]  (%p2231_p5), %s2135_s23, 512, %s2141_s22, %s995_s10, %s1667_s29, %s1667_s29, %s1668_s9  }
 0x48d   : > { %p325_p5 = scmp.lt.s32.totalorder %s1636_s18, 2 }
 0x48f   : > { %s2243_s18 = smov (!%p325_p5, %s1636_s18), 2 }
 0x490   : > { %s1230_s28 = sshll.u32 %s2243_s18, 5 }
 0x491   : > { %s333_s23 = scalar_lea.vmem %s2206_s4, %s1230_s28 }
 0x4b9   : > { %v687_v21 = vpop.permute.xlu0 %686 }
 0x4ba   : > { %v692_v26 = vadd.f32 %v687_v21, %v2058_v11 }
 0x4bd   : > { %v701_v22 = vpop.permute.xlu0 %700  ;;  %v689_v23 = vpop.permute.xlu1 %688 }
 0x4be   : > { %v706_v29 = vadd.f32 %v701_v22, %v692_v26  ;;  %v693_v30 = vadd.f32 %v689_v23, %v2060_v13 }
 0x4c1   : > { %v715_v24 = vpop.permute.xlu0 %714  ;;  %v703_v25 = vpop.permute.xlu1 %702 }
 0x4c2   : > { %v720_v31 = vadd.f32 %v715_v24, %v706_v29  ;;  %v707_v34 = vadd.f32 %v703_v25, %v693_v30 }
 0x4c5   : > { %v728_v27 = vpop.permute.xlu0 %727  ;;  %v717_v28 = vpop.permute.xlu1 %716 }
 0x4c6   : > { %v733_v35 = vadd.f32 %v728_v27, %v720_v31  ;;  %v721_v36 = vadd.f32 %v717_v28, %v707_v34 }
 0x4c9   : > { %v742_v32 = vpop.permute.xlu0 %741  ;;  %v730_v33 = vpop.permute.xlu1 %729 }
 0x4ca   : > { %v747_v37 = vadd.f32 %v742_v32, %v733_v35  ;;  %v734_v40 = vadd.f32 %v730_v33, %v721_v36 }
 0x4cd   : > { %v756_v38 = vpop.permute.xlu0 %755  ;;  %v744_v39 = vpop.permute.xlu1 %743 }
 0x4ce   : > { %v761_v41 = vadd.f32 %v756_v38, %v747_v37  ;;  %v748_v43 = vadd.f32 %v744_v39, %v734_v40 }
 0x4d0   : > { %v1216_v42 = vmul.f32 -1.442695, %v761_v41 }
 0x4d1   : > { %v908_v11 = vpop.permute.xlu0 %907  ;;  %v758_v44 = vpop.permute.xlu1 %757 }
 0x4d2   : > { %1452 = vpow2.f32 %v1216_v42  ;;  %v762_v45 = vadd.f32 %v758_v44, %v748_v43  ;;  %v913_v53 = vadd.f32 %v908_v11, %v2089_v47 }
 0x4d4   : > { %v1217_v13 = vmul.f32 -1.442695, %v762_v45 }
 0x4d5   : > { %v921_v46 = vpop.permute.xlu0 %920  ;;  %v910_v48 = vpop.permute.xlu1 %909 }
 0x4d6   : > { %1454 = vpow2.f32 %v1217_v13  ;;  %v926_v57 = vadd.f32 %v921_v46, %v913_v53  ;;  %v914_v59 = vadd.f32 %v910_v48, %v2093_v49 }
 0x4d9   : > { %v934_v50 = vpop.permute.xlu0 %933  ;;  %v923_v51 = vpop.permute.xlu1 %922 }
 0x4da   : > { %v939_v60 = vadd.f32 %v934_v50, %v926_v57  ;;  %v927_v1 = vadd.f32 %v923_v51, %v914_v59 }
 0x4dc   : > { %v1453_v52 = vpop.eup %1452 }
 0x4dd   : > { %v769_v54 = vadd.f32 1.0, %v1453_v52  ;;  %v947_v55 = vpop.permute.xlu0 %946  ;;  %v936_v56 = vpop.permute.xlu1 %935 }
 0x4de   : > { %v952_v2 = vadd.f32 %v947_v55, %v939_v60  ;;  %v940_v3 = vadd.f32 %v936_v56, %v927_v1 }
 0x4df   : > { %1456 = vrcp.f32 %v769_v54 }
 0x4e0   : > { %v1455_v58 = vpop.eup %1454 }
 0x4e1   : > { %v770_v61 = vadd.f32 1.0, %v1455_v58  ;;  %v960_v62 = vpop.permute.xlu0 %959  ;;  %v949_v63 = vpop.permute.xlu1 %948 }
 0x4e2   : > { %v965_v4 = vadd.f32 %v960_v62, %v952_v2  ;;  %v953_v6 = vadd.f32 %v949_v63, %v940_v3 }
 0x4e3   : > { %1458 = vrcp.f32 %v770_v61 }
 0x4e5   : > { %v973_v47 = vpop.permute.xlu0 %972  ;;  %v962_v5 = vpop.permute.xlu1 %961 }
 0x4e6   : > { %v978_v7 = vadd.f32 %v973_v47, %v965_v4  ;;  %v966_v8 = vadd.f32 %v962_v5, %v953_v6 }
 0x4e8   : > { %v1222_v49 = vmul.f32 -1.442695, %v978_v7 }
 0x4e9   : > { %v1457_v9 = vpop.eup %1456  ;;  %v975_v10 = vpop.permute.xlu1 %974 }
 0x4ea   : > { %776 = vst.msk [vmem:[%s333_s23] sm:$0xff] %vm775_vm0, %v1457_v9  ;;  %1460 = vpow2.f32 %v1222_v49  ;;  %v979_v0 = vadd.f32 %v975_v10, %v966_v8 }
 0x4ec   : > { %v1223_v12 = vmul.f32 -1.442695, %v979_v0 }
 0x4ed   : > { %v1459_v14 = vpop.eup %1458 }
 0x4ee   : > { %777 = vst.msk [vmem:[%s333_s23 + $0x8] sm:$0xff] %vm775_vm0, %v1459_v14  ;;  %1462 = vpow2.f32 %v1223_v12 }
 0x4f4   : > { %v1461_v15 = vpop.eup %1460 }
 0x4f5   : > { %v986_v16 = vadd.f32 1.0, %v1461_v15 }
 0x4f7   : > { %1464 = vrcp.f32 %v986_v16 }
 0x4f8   : > { %v1463_v17 = vpop.eup %1462 }
 0x4f9   : > { %v987_v18 = vadd.f32 1.0, %v1463_v17 }
 0x4fb   : > { %1466 = vrcp.f32 %v987_v18 }
 0x501   : > { %v1465_v19 = vpop.eup %1464 }
 0x502   : > { %992 = vst.msk [vmem:[%s333_s23 + $0x10] sm:$0xff] %vm775_vm0, %v1465_v19 }
 0x505   : > { %v1467_v20 = vpop.eup %1466 }
 0x506   : > { %993 = vst.msk [vmem:[%s333_s23 + $0x18] sm:$0xff] %vm775_vm0, %v1467_v20 }
 0x507 PF: > { %p1384_p3 = scmp.ge.s32.totalorder %s1644_s20, 2  ;;  %s1037_s18 = sand.u32 1, %s1624_s15  }
 0x508   : > { %p2232_p6 = scmp.ne.s32.totalorder %s2219_s30, 0  ;;  %s1038_s5 = scalar_lea.sflag [#allocation5], %s1037_s18 }
 0x50a   : > { %p1380_p10 = pnand %p1384_p3, %p2232_p6 }
 0x50c   : > { %1619 = dma.done.wait (!%p1380_p10), %s1038_s5, 512  }
 0x50d   : > { %1621 = vsyncadd (!%p1380_p10), %s1038_s5, 4294966784  ;;  %s24_s20 = sadd.s32 1, %s1644_s20   ;;  %s2233_s0 = sld [smem:[#allocation14_spill]] }
 0x50e   : > { %p21_p12 = scmp.ge.s32.totalorder %s24_s20, 5   ;;  %s2234_s8 = sld [smem:[#allocation13_spill]] }
 0x50f   : > { %s2235_s15 = smov %s1628_s16  ;;  %s2236_s16 = smov %s1632_s17 }
 0x510   : > { %s2238_s18 = smov %s1640_s19  ;;  %23 = sbr.rel (!%p21_p12) target bundleno = 11 (0xb), region = 113 }
 0x513   : > { %s2237_s17 = smov %s2233_s0 }
 0x514   : > { %s2239_s19 = smov %s2234_s8 }
 0x517   :  { %1055 = vsyncpa [#allocation4], 1 }
 0x518   :  { %1057 = vsyncpa [#allocation4 + $0x1], 1 }
 0x519   :  { %1058 = vsyncpa [#allocation7], 1 }
 0x51a   :  { %1060 = vsyncpa [#allocation7 + $0x1], 1 }
 0x51b   :  { %1061 = vsyncpa [#allocation5], 1 }
 0x51c   :  { %1063 = vsyncpa [#allocation5 + $0x1], 1 }

</bundles_post_ra>
